<compile_context>
chip_gen: v5e
topology: v5e:2x2
jax: 0.10.0
libtpu: 0.0.40
codegen_flags: <defaults>
</compile_context>

<pallas_src>
import jax
import jax.numpy as jnp
from jax.experimental import pallas as pl
from jax.experimental.pallas import tpu as pltpu


def _round_up(x, m):
    return (x + m - 1) // m * m


def _vmem_capacity_bytes():
    try:
        return int(pltpu.get_tpu_info().vmem_capacity_bytes)
    except Exception:
        return 64 * (1 << 20)  # conservative: v7x per-TensorCore VMEM


def _logreg_kernel(x_ref, w_ref, b_ref, o_ref):
    # x_ref: (TILE_B, D)  streamed batch tile, x's own dtype
    # w_ref: (D, 1)       weight column, resident in VMEM across grid steps
    # b_ref: (1, 1)       f32 scalar bias in SMEM
    # o_ref: (TILE_B, 1)  per-row probabilities
    #
    # x as LHS keeps the contraction on x's minor (lane) dim -> no XLU
    # transpose of the streamed tile; accumulation is f32 on the MXU.
    logits = jnp.dot(x_ref[...], w_ref[...], preferred_element_type=jnp.float32)
    logits = logits + b_ref[0, 0]
    o_ref[...] = jax.nn.sigmoid(logits).astype(o_ref.dtype)


def logistic_regression_forward(x, weight, bias, *, tile_b=None):
    """x: (B, D), weight: (1, D), bias: (1,) -> (B, 1).

    Matches torch.sigmoid(nn.Linear(D, 1)(x)); output dtype follows x.dtype.
    NOTE: weight is cast to x.dtype (bf16 when x is bf16); fine for logistic
    regression, slightly looser than torch's f32 params.
    """
    B, D = x.shape
    dtype = x.dtype
    itemsize = jnp.dtype(dtype).itemsize
    padded_d = _round_up(D, 128)            # VMEM lane footprint of one row
    bytes_per_row = padded_d * itemsize

    w = weight.reshape(D, 1).astype(dtype)        # tiny; VMEM-resident column
    b = bias.reshape(1, 1).astype(jnp.float32)    # scalar; lives in SMEM

    vmem_cap = _vmem_capacity_bytes()
    if tile_b is None:
        # One x tile ~8-16 MiB (double-buffered 16-32 MiB): large enough to
        # amortize the ~0.35us per-grid-step overhead, small enough for the
        # tightest per-core VMEM (v7x: 64 MiB physical).
        per_tile_budget = min(16 << 20, max(4 << 20, vmem_cap // 6))
        align = 8                                        # sublane granularity
        t = max(align, per_tile_budget // bytes_per_row // align * align)
        # Keep >=2 grid steps when B allows it so the "parallel" batch axis
        # can split across v7x's two TensorCores (no-op on v5e/v6e).
        half_cap = max(align, _round_up((B + 1) // 2, align))
        tile_b = min(t, half_cap)
    tile_b = max(8, _round_up(int(tile_b), 8))

    n_steps = pl.cdiv(B, tile_b)            # ragged last block: no host-side pad
    tile_bytes = tile_b * bytes_per_row

    # Cover the double-buffered tile (v5e's default scoped VMEM is 16 MiB) but
    # stay well under the smallest physical VMEM (v7x: 64 MiB per core).
    vmem_limit = min(max(32 << 20, 2 * tile_bytes + (4 << 20)),
                     max(32 << 20, vmem_cap - (16 << 20)))
    # TODO(synk): no D-tiling fallback; enormous D (>~1M f32) would need a
    # K-accumulation grid axis to keep a single (8, D) tile inside VMEM.

    x_index_map = lambda i: (i, 0)
    x_spec = pl.BlockSpec((tile_b, D), x_index_map)
    if tile_bytes <= (4 << 20) and n_steps >= 4:
        # Small tiles but long grid (typical on v7x): deeper buffering keeps
        # more than one input DMA in flight across step boundaries.
        try:
            x_spec = pl.BlockSpec((tile_b, D), x_index_map,
                                  pipeline_mode=pl.Buffered(3))
        except Exception:
            pass  # older jax: fall back to default double buffering

    out = pl.pallas_call(
        _logreg_kernel,
        out_shape=jax.ShapeDtypeStruct((B, 1), dtype),
        grid=(n_steps,),
        in_specs=[
            x_spec,                                               # streamed x
            pl.BlockSpec((D, 1), lambda i: (0, 0)),               # resident W
            pl.BlockSpec(memory_space=pltpu.MemorySpace.SMEM),    # scalar bias
        ],
        out_specs=pl.BlockSpec((tile_b, 1), lambda i: (i, 0)),
        compiler_params=pltpu.CompilerParams(
            dimension_semantics=("parallel",),
            vmem_limit_bytes=int(vmem_limit),
        ),
        cost_estimate=pl.CostEstimate(
            flops=2 * B * D,
            bytes_accessed=B * D * itemsize + B * itemsize + D * itemsize,
            transcendentals=B,
        ),
    )(x, w, b)
    return out


def _ref_forward(x, weight, bias):
    # Precision-robust reference (pure f32 elementwise + reduce, no MXU).
    xf = x.astype(jnp.float32)
    wf = weight.astype(jnp.float32)
    logits = jnp.sum(xf * wf, axis=-1, keepdims=True) + bias.astype(jnp.float32)
    return jax.nn.sigmoid(logits)


if __name__ == "__main__":
    key = jax.random.PRNGKey(0)
    kx, kw, kb, kx2, kw2, kb2 = jax.random.split(key, 6)

    # --- small case, consistent with nn.Linear(input_dim, 1) ---
    batch, input_dim = 8, 32
    x = jax.random.normal(kx, (batch, input_dim), dtype=jnp.float32)
    bound = 1.0 / jnp.sqrt(jnp.float32(input_dim))
    weight = jax.random.uniform(kw, (1, input_dim), jnp.float32, -bound, bound)
    bias = jax.random.uniform(kb, (1,), jnp.float32, -bound, bound)

    out = jax.block_until_ready(logistic_regression_forward(x, weight, bias))
    ref = _ref_forward(x, weight, bias)
    assert out.shape == (batch, 1)
    assert jnp.allclose(out, ref, atol=1e-4, rtol=1e-4), (out, ref)

    # --- bf16 inputs: half the HBM traffic, f32 accumulation on the MXU ---
    x_bf16 = x.astype(jnp.bfloat16)
    out_bf16 = jax.block_until_ready(
        logistic_regression_forward(x_bf16, weight, bias))
    ref_bf16 = _ref_forward(x_bf16, weight.astype(jnp.bfloat16), bias)
    assert out_bf16.shape == (batch, 1)
    assert jnp.allclose(out_bf16.astype(jnp.float32), ref_bf16, atol=1e-2)

    # --- multi-step grid + ragged last block (300 = 2*128 + 44, no pad copy) ---
    batch2, input_dim2 = 300, 256
    x2 = jax.random.normal(kx2, (batch2, input_dim2), dtype=jnp.float32)
    bound2 = 1.0 / jnp.sqrt(jnp.float32(input_dim2))
    weight2 = jax.random.uniform(kw2, (1, input_dim2), jnp.float32, -bound2, bound2)
    bias2 = jax.random.uniform(kb2, (1,), jnp.float32, -bound2, bound2)

    out2 = jax.block_until_ready(
        logistic_regression_forward(x2, weight2, bias2, tile_b=128))
    ref2 = _ref_forward(x2, weight2, bias2)
    assert out2.shape == (batch2, 1)
    assert jnp.allclose(out2, ref2, atol=1e-4, rtol=1e-4), (out2, ref2)

    # --- default (auto) tiling on the ragged shape as well ---
    out3 = jax.block_until_ready(
        logistic_regression_forward(x2, weight2, bias2))
    assert out3.shape == (batch2, 1)
    assert jnp.allclose(out3, ref2, atol=1e-4, rtol=1e-4)

    print("KERNEL_OK")
</pallas_src>

<mosaic_0001>
module attributes {stable_mosaic.version = 11 : i64} {
  func.func @_logreg_kernel(%arg0: i32, %arg1: memref<8x32xf32, #tpu.memory_space<vmem>>, %arg2: memref<32x1xf32, #tpu.memory_space<vmem>>, %arg3: memref<1x1xf32, #tpu.memory_space<smem>>, %arg4: memref<8x1xf32, #tpu.memory_space<vmem>>) attributes {dimension_semantics = [#tpu.dimension_semantics<parallel>], iteration_bounds = array<i64: 1>, scalar_prefetch = 0 : i64, scratch_operands = 0 : i64, tpu.core_type = #tpu.core_type<tc>, window_params = [{transform_indices = @transform_0, window_bounds = array<i64: 8, 32>}, {pipeline_mode = #tpu.pipeline_mode<synchronous>, transform_indices = @transform_1, window_bounds = array<i64: 32, 1>}, {transform_indices = @transform_2, window_bounds = array<i64: 1, 1>}, {transform_indices = @transform_3, window_bounds = array<i64: 8, 1>}]} {
    %c0 = arith.constant 0 : index
    %c0_0 = arith.constant 0 : index
    %0 = vector.load %arg1[%c0, %c0_0] : memref<8x32xf32, #tpu.memory_space<vmem>>, vector<8x32xf32>
    %c0_1 = arith.constant 0 : index
    %c0_2 = arith.constant 0 : index
    %1 = vector.load %arg2[%c0_1, %c0_2] : memref<32x1xf32, #tpu.memory_space<vmem>>, vector<32x1xf32>
    %cst = arith.constant dense<0.000000e+00> : vector<8x1xf32>
    %2 = tpu.matmul %0, %1, %cst {dimension_numbers = #tpu.dot_dimension_numbers<[1], [0], [0], [1], [0, 0, 1, 1], [], []>} : vector<8x32xf32>, vector<32x1xf32>, vector<8x1xf32> -> vector<8x1xf32>
    %c0_3 = arith.constant 0 : index
    %c0_4 = arith.constant 0 : index
    %3 = memref.load %arg3[%c0_3, %c0_4] : memref<1x1xf32, #tpu.memory_space<smem>>
    %4 = vector.broadcast %3 : f32 to vector<8x1xf32>
    %5 = arith.addf %2, %4 : vector<8x1xf32>
    %6 = arith.negf %5 : vector<8x1xf32>
    %7 = math.exp %6 : vector<8x1xf32>
    %cst_5 = arith.constant 1.000000e+00 : f32
    %8 = vector.broadcast %cst_5 : f32 to vector<8x1xf32>
    %9 = arith.addf %8, %7 : vector<8x1xf32>
    %10 = arith.divf %8, %9 : vector<8x1xf32>
    %c0_6 = arith.constant 0 : index
    %c0_7 = arith.constant 0 : index
    %11 = vector.load %arg4[%c0_6, %c0_7] : memref<8x1xf32, #tpu.memory_space<vmem>>, vector<8x1xf32>
    tpu.vector_store %arg4[%c0_6, %c0_7], %10 {strides = array<i32>} : memref<8x1xf32, #tpu.memory_space<vmem>>, vector<8x1xf32>,
    return
  }
  func.func @transform_0(%arg0: i32) -> (i32, i32) {
    %c0_i32 = arith.constant 0 : i32
    %c0_i32_0 = arith.constant 0 : i32
    return %arg0, %c0_i32 : i32, i32
  }
  func.func @transform_1(%arg0: i32) -> (i32, i32) {
    %c0_i32 = arith.constant 0 : i32
    %c0_i32_0 = arith.constant 0 : i32
    %c0_i32_1 = arith.constant 0 : i32
    return %c0_i32, %c0_i32_0 : i32, i32
  }
  func.func @transform_2(%arg0: i32) -> (i32, i32) {
    %c0_i32 = arith.constant 0 : i32
    %c0_i32_0 = arith.constant 0 : i32
    %c0_i32_1 = arith.constant 0 : i32
    return %c0_i32, %c0_i32_0 : i32, i32
  }
  func.func @transform_3(%arg0: i32) -> (i32, i32) {
    %c0_i32 = arith.constant 0 : i32
    %c0_i32_0 = arith.constant 0 : i32
    return %arg0, %c0_i32 : i32, i32
  }
}

</mosaic_0001>

<bundles_post_ra>
// kernel: tpu_custom_call.1
= control target key start
LH: loop header
LB: loop body
LE: loop exit
PB: predicated region body
PF: predicated region fallthrough
CT: control target
= control target key end

     0   :  { %vm22_vm0 = vcmask 261120   ;;  %vm65_vm4 = vcmask 7168   ;;  %s118_s1 = inlined_call_operand.vmem [shape: f32[32,1], index: 1, kind: input, shape index: {}]   ;;  %s119_s0 = inlined_call_operand.vmem [shape: f32[8,32], index: 0, kind: input, shape index: {}]   ;;  %s120_s2 = inlined_call_operand.<no memory space> [shape: f32[1,1], index: 2, kind: input, shape index: {}]   ;;  %s121_s3 = inlined_call_operand.vmem [shape: f32[8,1], index: 3, kind: output, shape index: {}]  }
   0x1   :  { %v19_v0 = vld [vmem:[%s118_s1 + $0x18] sm:$0xff]  ;;  %v18_v1 = vld [vmem:[%s118_s1 + $0x10] sm:$0xff]  ;;  %v17_v2 = vld [vmem:[%s118_s1 + $0x8] sm:$0xff]  ;;  %v21_v5 = vstv %s120_s2 }
   0x2   :  { %38 = vmatpush.msra.mxu0 %v19_v0  ;;  %v16_v3 = vld [vmem:[%s118_s1] sm:$0xff] }
   0x3   :  { %v15_v4 = vld [vmem:[%s119_s0] sm:$0xff] }
   0x4   :  { %39 = vmatpush.msra.mxu0 %v18_v1 }
   0x6   :  { %40 = vmatpush.msra.mxu0 %v17_v2 }
   0x8   :  { %41 = vmatpush.msra.mxu0 %v16_v3 }
   0x9   :  { %71 = vmatmul.msk.f32.vlgmr.msra.gmra.mxu0 %vm22_vm0, %v15_v4 }
  0x86   :  { %v43_v6 = vpop.f32.mrf.mxu0 }
  0x87   :  { %v44_v7 = vadd.f32 %v43_v6, %v21_v5 }
  0x89   :  { %v72_v8 = vmul.f32 -1.442695, %v44_v7 }
  0x8b   :  { %73 = vpow2.f32 %v72_v8 }
  0x91   :  { %v74_v9 = vpop.eup %73 }
  0x92   :  { %v49_v10 = vadd.f32 1.0, %v74_v9 }
  0x94   :  { %75 = vrcp.f32 %v49_v10  ;;  %v61_v14 = vand.u32 2147483648, %v49_v10  ;;  %v59_v16 = vand.u32 2147483647, %v49_v10  ;;  %vm55_vm2 = vweird.f32 %v49_v10 }
  0x96   :  { %v62_v18 = vor.u32 1.1754944e-38, %v61_v14  ;;  %vm60_vm5 = vcmp.eq.f32.partialorder %v59_v16, 8.507059e+37 }
  0x9a   :  { %v76_v11 = vpop.eup %75 }
  0x9b   :  { %v51_v12 = vmul.f32 %v76_v11, %v49_v10  ;;  %vm56_vm1 = vweird.f32 %v76_v11 }
  0x9c   :  { %vm57_vm3 = vmor %vm55_vm2, %vm56_vm1 }
  0x9d   :  { %v52_v13 = vsub.f32 1.0, %v51_v12 }
  0x9f   :  { %v53_v15 = vmul.f32 %v76_v11, %v52_v13 }
  0xa1   :  { %v54_v17 = vadd.f32 %v76_v11, %v53_v15 }
  0xa3   :  { %v58_v19 = vsel %vm57_vm3, %v76_v11, %v54_v17 }
  0xa4   :  { %v63_v20 = vsel %vm60_vm5, %v62_v18, %v58_v19 }
  0xa5   :  { %66 = vst.msk [vmem:[%s121_s3] sm:$0xff] %vm65_vm4, %v63_v20 }

</bundles_post_ra>
